<compile_context>
chip_gen: v7x
topology: tpu7x:2x2x1
jax: 0.10.0
libtpu: 0.0.40
codegen_flags: <defaults>
</compile_context>

<pallas_src>
import jax
import jax.numpy as jnp
from jax.experimental import pallas as pl
from jax.experimental.pallas import tpu as pltpu

BN_EPS = 1e-5


def _fused_conv_bn_relu_kernel(w_ref, x_ref, gb_ref, o_ref):
    """One output-channel tile of the fused layer.

    w_ref:  (TILE_CO, K_max*C_in)   block-sparse fused conv weights
    x_ref:  (K_max*C_in, N*L)       im2col'd input (lane-dense, shared by all tiles)
    gb_ref: (TILE_CO, 2)            [:, 0] = gamma, [:, 1] = beta
    o_ref:  (TILE_CO, N*L)
    """
    # Single MXU contraction over all taps and input channels.
    acc = jnp.dot(w_ref[...], x_ref[...], preferred_element_type=jnp.float32)

    # BatchNorm1d, training mode: per-channel stats over the full (N, L) extent
    # (== the whole last axis here), biased variance, eps = 1e-5.
    mean = jnp.mean(acc, axis=1, keepdims=True)
    centered = acc - mean
    var = jnp.mean(centered * centered, axis=1, keepdims=True)
    gamma = gb_ref[:, 0:1]
    beta = gb_ref[:, 1:2]
    y = centered * jax.lax.rsqrt(var + BN_EPS) * gamma + beta

    o_ref[...] = jnp.maximum(y, 0.0)


def _round_up(x, m):
    return (x + m - 1) // m * m


def build_layer_forward(x, params):
    """x: (N, C_in, L) f32; params: list of (w, b, gamma, beta) per sub-layer.

    Returns relu(concat_i(BN_i(Conv1d_i(samepad_i(x)))), axis=1): (N, sum(C_out_i), L).
    """
    N, C_in, L = x.shape
    ks = [w.shape[2] for (w, _, _, _) in params]
    K_max = max(ks)
    max_left, max_right = (K_max - 1) // 2, K_max // 2
    KC = K_max * C_in
    NL = N * L

    # ---- im2col: pad x ONCE, build the K_max shifted views, lane-dense (KC, N*L). ----
    x_pad = jnp.pad(x, ((0, 0), (0, 0), (max_left, max_right)))
    cols = jnp.stack([x_pad[:, :, d:d + L] for d in range(K_max)], axis=0)  # (K,N,Cin,L)
    x_col = jnp.transpose(cols, (0, 2, 1, 3)).reshape(KC, NL)

    # ---- fused block-sparse weight + packed gamma/beta (conv bias dropped: BN cancels it). ----
    w_blocks, gammas, betas = [], [], []
    for (w, _b, gamma, beta) in params:
        C_out, _, K = w.shape
        d0 = max_left - (K - 1) // 2          # tap-offset of this layer inside the shared pad
        blk = jnp.zeros((C_out, K_max, C_in), jnp.float32)
        blk = blk.at[:, d0:d0 + K, :].set(jnp.transpose(w, (0, 2, 1)))
        w_blocks.append(blk.reshape(C_out, KC))
        gammas.append(gamma)
        betas.append(beta)
    w_big = jnp.concatenate(w_blocks, axis=0)                                   # (C_total, KC)
    gb = jnp.stack([jnp.concatenate(gammas), jnp.concatenate(betas)], axis=1)   # (C_total, 2)
    C_total = w_big.shape[0]

    # ---- channel tiling (the only grid axis that preserves BN batch stats). ----
    tile_co = 128 if C_total >= 128 else _round_up(C_total, 8)
    c_pad = _round_up(C_total, tile_co)
    if c_pad > C_total:
        w_big = jnp.pad(w_big, ((0, c_pad - C_total), (0, 0)))
        gb = jnp.pad(gb, ((0, c_pad - C_total), (0, 0)))
    grid = (c_pad // tile_co,)

    y_flat = pl.pallas_call(
        _fused_conv_bn_relu_kernel,
        out_shape=jax.ShapeDtypeStruct((c_pad, NL), jnp.float32),
        grid=grid,
        in_specs=[
            pl.BlockSpec((tile_co, KC), lambda i: (i, 0)),
            pl.BlockSpec((KC, NL), lambda i: (0, 0)),
            pl.BlockSpec((tile_co, 2), lambda i: (i, 0)),
        ],
        out_specs=pl.BlockSpec((tile_co, NL), lambda i: (i, 0)),
        compiler_params=pltpu.CompilerParams(
            dimension_semantics=("parallel",)),
    )(w_big, x_col, gb)

    # (C_total, N*L) -> (N, C_total, L)
    return jnp.transpose(y_flat[:C_total].reshape(C_total, N, L), (1, 0, 2))


def _reference_forward(x, params):
    """Pure-JAX reference matching the PyTorch module exactly (incl. conv bias)."""
    outs = []
    L = x.shape[2]
    for (w, b, gamma, beta) in params:
        _, _, K = w.shape
        left, right = (K - 1) // 2, K // 2
        xp = jnp.pad(x, ((0, 0), (0, 0), (left, right)))
        acc = jnp.zeros((x.shape[0], w.shape[0], L), jnp.float32)
        for k in range(K):
            acc = acc + jnp.einsum('oc,ncl->nol', w[:, :, k], xp[:, :, k:k + L],
                                   precision=jax.lax.Precision.HIGHEST)
        acc = acc + b[None, :, None]
        mean = jnp.mean(acc, axis=(0, 2), keepdims=True)
        var = jnp.mean((acc - mean) ** 2, axis=(0, 2), keepdims=True)
        y = ((acc - mean) * jax.lax.rsqrt(var + BN_EPS) * gamma[None, :, None]
             + beta[None, :, None])
        outs.append(y)
    return jnp.maximum(jnp.concatenate(outs, axis=1), 0.0)


def init_params(key, layer_parameters):
    params = []
    for (in_ch, out_ch, k) in layer_parameters:
        key, k1, k2, k3, k4 = jax.random.split(key, 5)
        w = 0.1 * jax.random.normal(k1, (out_ch, in_ch, k), jnp.float32)
        b = 0.1 * jax.random.normal(k2, (out_ch,), jnp.float32)
        gamma = 1.0 + 0.1 * jax.random.normal(k3, (out_ch,), jnp.float32)
        beta = 0.1 * jax.random.normal(k4, (out_ch,), jnp.float32)
        params.append((w, b, gamma, beta))
    return params


if __name__ == "__main__":
    # layer_parameters format: [(in_channels, out_channels, kernel_size), ...]
    layer_parameters = [(4, 8, 1), (4, 8, 2), (4, 8, 3)]
    N, C_in, L = 2, 4, 128

    key = jax.random.PRNGKey(0)
    key, kx = jax.random.split(key)
    x = jax.random.normal(kx, (N, C_in, L), jnp.float32)
    params = init_params(key, layer_parameters)

    fwd = jax.jit(build_layer_forward)
    out = jax.block_until_ready(fwd(x, params))

    expected_channels = sum(p[1] for p in layer_parameters)
    assert out.shape == (N, expected_channels, L), out.shape
    assert out.dtype == jnp.float32
    assert bool(jnp.all(out >= 0.0))  # relu

    ref = _reference_forward(x, params)
    max_err = float(jnp.max(jnp.abs(out - ref)))
    assert bool(jnp.allclose(out, ref, rtol=5e-3, atol=5e-3)), max_err
    print("KERNEL_OK")
</pallas_src>

<mosaic_0001>
module attributes {stable_mosaic.version = 11 : i64} {
  func.func @_fused_conv_bn_relu_kernel(%arg0: i32, %arg1: memref<24x12xf32, #tpu.memory_space<vmem>>, %arg2: memref<12x256xf32, #tpu.memory_space<vmem>>, %arg3: memref<24x2xf32, #tpu.memory_space<vmem>>, %arg4: memref<24x256xf32, #tpu.memory_space<vmem>>) attributes {dimension_semantics = [#tpu.dimension_semantics<parallel>], iteration_bounds = array<i64: 1>, scalar_prefetch = 0 : i64, scratch_operands = 0 : i64, tpu.core_type = #tpu.core_type<tc>, window_params = [{transform_indices = @transform_0, window_bounds = array<i64: 24, 12>}, {pipeline_mode = #tpu.pipeline_mode<synchronous>, transform_indices = @transform_1, window_bounds = array<i64: 12, 256>}, {transform_indices = @transform_2, window_bounds = array<i64: 24, 2>}, {transform_indices = @transform_3, window_bounds = array<i64: 24, 256>}]} {
    %c0 = arith.constant 0 : index
    %c0_0 = arith.constant 0 : index
    %0 = vector.load %arg1[%c0, %c0_0] : memref<24x12xf32, #tpu.memory_space<vmem>>, vector<24x12xf32>
    %c0_1 = arith.constant 0 : index
    %c0_2 = arith.constant 0 : index
    %1 = vector.load %arg2[%c0_1, %c0_2] : memref<12x256xf32, #tpu.memory_space<vmem>>, vector<12x256xf32>
    %cst = arith.constant dense<0.000000e+00> : vector<24x256xf32>
    %2 = tpu.matmul %0, %1, %cst {dimension_numbers = #tpu.dot_dimension_numbers<[1], [0], [0], [1], [0, 0, 1, 1], [], []>} : vector<24x12xf32>, vector<12x256xf32>, vector<24x256xf32> -> vector<24x256xf32>
    %cst_3 = arith.constant dense<0.000000e+00> : vector<24xf32>
    %3 = vector.multi_reduction <add>, %2, %cst_3 [1] : vector<24x256xf32> to vector<24xf32>
    %4 = vector.shape_cast %3 : vector<24xf32> to vector<24x1xf32>
    %cst_4 = arith.constant 2.560000e+02 : f32
    %5 = vector.broadcast %cst_4 : f32 to vector<24x1xf32>
    %6 = arith.divf %4, %5 : vector<24x1xf32>
    %7 = vector.broadcast %6 : vector<24x1xf32> to vector<24x256xf32>
    %8 = arith.subf %2, %7 : vector<24x256xf32>
    %9 = arith.mulf %8, %8 : vector<24x256xf32>
    %cst_5 = arith.constant dense<0.000000e+00> : vector<24xf32>
    %10 = vector.multi_reduction <add>, %9, %cst_5 [1] : vector<24x256xf32> to vector<24xf32>
    %11 = vector.shape_cast %10 : vector<24xf32> to vector<24x1xf32>
    %cst_6 = arith.constant 2.560000e+02 : f32
    %12 = vector.broadcast %cst_6 : f32 to vector<24x1xf32>
    %13 = arith.divf %11, %12 : vector<24x1xf32>
    %c0_7 = arith.constant 0 : index
    %c0_8 = arith.constant 0 : index
    %14 = vector.load %arg3[%c0_7, %c0_8] : memref<24x2xf32, #tpu.memory_space<vmem>>, vector<24x1xf32>
    %c0_9 = arith.constant 0 : index
    %c1 = arith.constant 1 : index
    %15 = vector.load %arg3[%c0_9, %c1] : memref<24x2xf32, #tpu.memory_space<vmem>>, vector<24x1xf32>
    %cst_10 = arith.constant 9.99999974E-6 : f32
    %16 = vector.broadcast %cst_10 : f32 to vector<24x1xf32>
    %17 = arith.addf %13, %16 : vector<24x1xf32>
    %18 = math.rsqrt %17 : vector<24x1xf32>
    %19 = vector.broadcast %18 : vector<24x1xf32> to vector<24x256xf32>
    %20 = arith.mulf %8, %19 : vector<24x256xf32>
    %21 = vector.broadcast %14 : vector<24x1xf32> to vector<24x256xf32>
    %22 = arith.mulf %20, %21 : vector<24x256xf32>
    %23 = vector.broadcast %15 : vector<24x1xf32> to vector<24x256xf32>
    %24 = arith.addf %22, %23 : vector<24x256xf32>
    %cst_11 = arith.constant 0.000000e+00 : f32
    %25 = vector.broadcast %cst_11 : f32 to vector<24x256xf32>
    %26 = arith.maximumf %24, %25 : vector<24x256xf32>
    %c0_12 = arith.constant 0 : index
    %c0_13 = arith.constant 0 : index
    %27 = vector.load %arg4[%c0_12, %c0_13] : memref<24x256xf32, #tpu.memory_space<vmem>>, vector<24x256xf32>
    tpu.vector_store %arg4[%c0_12, %c0_13], %26 {strides = array<i32>} : memref<24x256xf32, #tpu.memory_space<vmem>>, vector<24x256xf32>,
    return
  }
  func.func @transform_0(%arg0: i32) -> (i32, i32) {
    %c0_i32 = arith.constant 0 : i32
    %c0_i32_0 = arith.constant 0 : i32
    return %arg0, %c0_i32 : i32, i32
  }
  func.func @transform_1(%arg0: i32) -> (i32, i32) {
    %c0_i32 = arith.constant 0 : i32
    %c0_i32_0 = arith.constant 0 : i32
    %c0_i32_1 = arith.constant 0 : i32
    return %c0_i32, %c0_i32_0 : i32, i32
  }
  func.func @transform_2(%arg0: i32) -> (i32, i32) {
    %c0_i32 = arith.constant 0 : i32
    %c0_i32_0 = arith.constant 0 : i32
    return %arg0, %c0_i32 : i32, i32
  }
  func.func @transform_3(%arg0: i32) -> (i32, i32) {
    %c0_i32 = arith.constant 0 : i32
    %c0_i32_0 = arith.constant 0 : i32
    return %arg0, %c0_i32 : i32, i32
  }
}

</mosaic_0001>

<bundles_post_ra>
// kernel: build_layer_forward.1
= control target key start
LH: loop header
LB: loop body
LE: loop exit
PB: predicated region body
PF: predicated region fallthrough
CT: control target
= control target key end

     0   :  { %vm31_vm0 = vcmask 1043456   ;;  %vm255_vm1 = vmmov 1   ;;  %v256_v2 = vmov 0.0   ;;  %vm21_vm3 = vcmask 97280   ;;  %s327_s1 = inlined_call_operand.vmem [shape: f32[12,256], index: 1, kind: input, shape index: {}]   ;;  %s328_s0 = inlined_call_operand.vmem [shape: f32[24,12], index: 0, kind: input, shape index: {}]   ;;  %s329_s2 = inlined_call_operand.vmem [shape: f32[24,2], index: 2, kind: input, shape index: {}]   ;;  %s330_s3 = inlined_call_operand.vmem [shape: f32[24,256], index: 3, kind: output, shape index: {}]  }
   0x1   :  { %v18_v0 = vld [vmem:[%s327_s1 + $0x8] sm:$0xff]  ;;  %v20_v1 = vld [vmem:[%s327_s1 + $0x18] sm:$0xf]  ;;  %vm234_vm2 = vmpackc.low %vm31_vm0, %vm255_vm1  ;;  %102 = vmatprep.mubr.f32.mxu0 %v256_v2  ;;  %108 = vmatprep.mubr.f32.mxu1 %v256_v2  ;;  %v257_v19 = vmov 0   ;;  %v258_v37 = vmov 1  }
   0x2   :  { %v233_v3 = vpack.c.bf16 %v20_v1, %v18_v0  ;;  %v17_v4 = vld [vmem:[%s327_s1] sm:$0xff]  ;;  %v19_v5 = vld [vmem:[%s327_s1 + $0x10] sm:$0xf]  ;;  %v15_v8 = vld [vmem:[%s328_s0 + $0x8] sm:$0xff]  ;;  %246 = vset.pattern.permute.xlu1 %v257_v19  ;;  %245 = vset.pattern.permute.xlu0 %v257_v19 }
   0x3   :  { %v236_v6 = vpack.c.bf16 %v19_v5, %v17_v4  ;;  %v14_v7 = vld [vmem:[%s328_s0] sm:$0xff]  ;;  %v16_v9 = vld [vmem:[%s328_s0 + $0x10] sm:$0xff]  ;;  %v159_v34 = vld [vmem:[%s329_s2 + $0x8] sm:$0xff] }
   0x4   :  { %235 = vmatprep.subr.msk.bf16.mxu0 %vm234_vm2, %v233_v3  ;;  %239 = vmatprep.subr.msk.bf16.mxu1 %vm234_vm2, %v233_v3  ;;  %v160_v35 = vld [vmem:[%s329_s2 + $0x10] sm:$0xff]  ;;  %v158_v36 = vld [vmem:[%s329_s2] sm:$0xff] }
   0x5   :  { %238 = vmatpush1.bf16.msk.msra.mxu0 %vm234_vm2, %v236_v6  ;;  %240 = vmatpush1.bf16.msk.msra.mxu1 %vm234_vm2, %v236_v6 }
   0x8   :  { %230 = vmatmul.mubr.msk.f32.vlgmr.msra.gmra.mrb[0].mxu0 %vm21_vm3, %v14_v7  ;;  %231 = vmatmul.mubr.msk.f32.vlgmr.msra.gmra.mrb[0].mxu1 %vm21_vm3, %v15_v8 }
   0x9   :  { %114 = vmatprep.mubr.f32.mxu1 %v256_v2 }
   0xc   :  { %232 = vmatmul.mubr.msk.f32.gmra.mrb[2].mxu1 %vm21_vm3, %v16_v9 }
  0xdb   :  { %v104_v10 = vpop.f32.mrb[0].mxu0  ;;  %v110_v11 = vpop.f32.mrb[0].mxu1 }
  0xdc   :  { %v106_v12 = vpop.f32.mrb[1].mxu0  ;;  %v112_v13 = vpop.f32.mrb[1].mxu1 }
  0xdd   :  { %v121_v14 = vadd.f32 %v106_v12, %v104_v10  ;;  %v124_v15 = vadd.f32 %v112_v13, %v110_v11 }
  0xdf   :  { %v116_v16 = vpop.f32.mrb[2].mxu1  ;;  %122 = vadd.xlane.f32.xlu0 %v121_v14 }
  0xe0   :  { %v118_v17 = vpop.f32.mrb[3].mxu1 }
  0xe1   :  { %v127_v18 = vadd.f32 %v118_v17, %v116_v16 }
  0xe3   :  { %128 = vadd.xlane.f32.xlu1 %v127_v18  ;;  %125 = vadd.xlane.f32.xlu0 %v124_v15 }
 0x16c   :  { %v123_v20 = vpop.xlane.xlu0 %122 }
 0x16d   :  { %v131_v21 = vmul.f32 0.00390625, %v123_v20 }
 0x16f   :  { %v134_v22 = vsub.f32 %v104_v10, %v131_v21  ;;  %v135_v23 = vsub.f32 %v106_v12, %v131_v21 }
 0x170   :  { %v126_v24 = vpop.xlane.xlu0 %125  ;;  %v129_v38 = vpop.xlane.xlu1 %128 }
 0x171   :  { %v132_v25 = vmul.f32 0.00390625, %v126_v24  ;;  %v140_v26 = vmul.f32 %v134_v22, %v134_v22  ;;  %v141_v27 = vmul.f32 %v135_v23, %v135_v23  ;;  %v133_v39 = vmul.f32 0.00390625, %v129_v38 }
 0x173   :  { %v136_v28 = vsub.f32 %v110_v11, %v132_v25  ;;  %v137_v29 = vsub.f32 %v112_v13, %v132_v25  ;;  %v146_v30 = vadd.f32 %v141_v27, %v140_v26  ;;  %v138_v40 = vsub.f32 %v116_v16, %v133_v39 }
 0x174   :  { %v139_v41 = vsub.f32 %v118_v17, %v133_v39 }
 0x175   :  { %v142_v31 = vmul.f32 %v136_v28, %v136_v28  ;;  %v143_v32 = vmul.f32 %v137_v29, %v137_v29  ;;  %147 = vadd.xlane.f32.xlu1 %v146_v30  ;;  %v144_v42 = vmul.f32 %v138_v40, %v138_v40 }
 0x176   :  { %v145_v43 = vmul.f32 %v139_v41, %v139_v41 }
 0x177   :  { %v149_v33 = vadd.f32 %v143_v32, %v142_v31 }
 0x178   :  { %v152_v44 = vadd.f32 %v145_v43, %v144_v42 }
 0x179   :  { %150 = vadd.xlane.f32.xlu0 %v149_v33 }
 0x186   :  { %180 = vperm.xlu1 %246, %v159_v34  }
 0x18a   :  { %185 = vperm.xlu1 %246, %v160_v35  }
 0x18e   :  { %247 = vset.pattern.permute.xlu1 %v258_v37 }
 0x18f   :  { %175 = vperm.xlu0 %245, %v158_v36   ;;  %195 = vperm.xlu1 %247, %v158_v36  }
 0x193   :  { %248 = vset.pattern.permute.xlu0 %v258_v37  ;;  %199 = vperm.xlu1 %247, %v159_v34  }
 0x1b7   :  { %153 = vadd.xlane.f32.xlu1 %v152_v44 }
 0x1c8   :  { %203 = vperm.xlu1 %247, %v160_v35  }
 0x202   :  { %v148_v45 = vpop.xlane.xlu1 %147 }
 0x203   :  { %v155_v46 = vmul.f32 0.00390625, %v148_v45 }
 0x205   :  { %v161_v47 = vadd.f32 1e-05, %v155_v46 }
 0x206   :  { %v151_v48 = vpop.xlane.xlu0 %150  ;;  %v181_v49 = vpop.permute.xlu1 %180 }
 0x207   :  { %v156_v50 = vmul.f32 0.00390625, %v151_v48  ;;  %249 = vrsqrt.f32 %v161_v47 }
 0x209   :  { %v162_v51 = vadd.f32 1e-05, %v156_v50 }
 0x20a   :  { %v186_v52 = vpop.permute.xlu1 %185 }
 0x20b   :  { %251 = vrsqrt.f32 %v162_v51 }
 0x20e   :  { %v176_v54 = vpop.permute.xlu0 %175  ;;  %v196_v55 = vpop.permute.xlu1 %195 }
 0x211   :  { %v250_v53 = vpop.eup %249 }
 0x212   :  { %v167_v56 = vmul.f32 %v250_v53, %v134_v22  ;;  %v168_v57 = vmul.f32 %v250_v53, %v135_v23  ;;  %v200_v3 = vpop.permute.xlu1 %199 }
 0x214   :  { %v188_v59 = vmul.f32 %v176_v54, %v167_v56  ;;  %v189_v60 = vmul.f32 %v176_v54, %v168_v57 }
 0x215   :  { %v252_v58 = vpop.eup %251 }
 0x216   :  { %v169_v61 = vmul.f32 %v252_v58, %v136_v28  ;;  %v170_v62 = vmul.f32 %v252_v58, %v137_v29  ;;  %v206_v63 = vadd.f32 %v196_v55, %v188_v59  ;;  %v207_v0 = vadd.f32 %v196_v55, %v189_v60 }
 0x218   :  { %v190_v1 = vmul.f32 %v181_v49, %v169_v61  ;;  %v191_v2 = vmul.f32 %v181_v49, %v170_v62  ;;  %v212_v4 = vmax.f32 %v206_v63, 0.0  ;;  %v213_v5 = vmax.f32 %v207_v0, 0.0 }
 0x21a   :  { %v208_v6 = vadd.f32 %v200_v3, %v190_v1  ;;  %v209_v7 = vadd.f32 %v200_v3, %v191_v2  ;;  %218 = vst [vmem:[%s330_s3] sm:$0xff] %v212_v4  ;;  %219 = vst [vmem:[%s330_s3 + $0x8] sm:$0xff] %v213_v5 }
 0x21c   :  { %v214_v8 = vmax.f32 %v208_v6, 0.0  ;;  %v215_v9 = vmax.f32 %v209_v7, 0.0 }
 0x21e   :  { %220 = vst [vmem:[%s330_s3 + $0x10] sm:$0xff] %v214_v8  ;;  %221 = vst [vmem:[%s330_s3 + $0x18] sm:$0xff] %v215_v9 }
 0x244   :  { %v154_v10 = vpop.xlane.xlu1 %153 }
 0x245   :  { %v157_v11 = vmul.f32 0.00390625, %v154_v10 }
 0x247   :  { %v163_v12 = vadd.f32 1e-05, %v157_v11 }
 0x248   :  { %v204_v18 = vpop.permute.xlu1 %203 }
 0x249   :  { %253 = vrsqrt.f32 %v163_v12 }
 0x253   :  { %v254_v13 = vpop.eup %253 }
 0x254   :  { %v171_v14 = vmul.f32 %v254_v13, %v138_v40  ;;  %v172_v15 = vmul.f32 %v254_v13, %v139_v41 }
 0x256   :  { %v192_v16 = vmul.f32 %v186_v52, %v171_v14  ;;  %v193_v17 = vmul.f32 %v186_v52, %v172_v15 }
 0x258   :  { %v210_v19 = vadd.f32 %v204_v18, %v192_v16  ;;  %v211_v20 = vadd.f32 %v204_v18, %v193_v17 }
 0x25a   :  { %v216_v21 = vmax.f32 %v210_v19, 0.0  ;;  %v217_v22 = vmax.f32 %v211_v20, 0.0 }
 0x25c   :  { %222 = vst [vmem:[%s330_s3 + $0x20] sm:$0xff] %v216_v21  ;;  %223 = vst [vmem:[%s330_s3 + $0x28] sm:$0xff] %v217_v22 }

</bundles_post_ra>
